<compile_context>
chip_gen: v7x
topology: tpu7x:2x2x1
jax: 0.10.0
libtpu: 0.0.40
codegen_flags: <defaults>
</compile_context>

<pallas_src>
import functools

import jax
import jax.numpy as jnp
from jax.experimental import pallas as pl
from jax.experimental.pallas import tpu as pltpu


def _round_up(x, m):
    return ((x + m - 1) // m) * m


def _lora_linear_kernel(x_ref, wf_ref, a_ref, bs_ref, o_ref, acc_ref, xa_ref,
                        *, hoist_xa):
    # grid = (i: row tiles [parallel], j: out-col tiles, k: in_f tiles [arbitrary, last])
    # x_ref:   (tm, tk)        token row tile / K slice
    # wf_ref:  (tk, tn)        frozen-weight tile
    # a_ref:   (tk, rank)      lora_A K slice
    # bs_ref:  (rank, tn) f32  lora_B col tile, pre-scaled by `scaling`
    # o_ref:   (tm, tn)        output tile
    # acc_ref: (tm, tn) f32    frozen-path accumulator (K reduction)
    # xa_ref:  (tm, rank) f32  x @ A accumulator (K reduction)
    j = pl.program_id(1)
    k = pl.program_id(2)
    nk = pl.num_programs(2)

    # TODO(synk): training-mode nn.Dropout would mask x here with
    # pltpu.prng_seed / pltpu.prng_random_bits; identity in eval mode.

    @pl.when(k == 0)
    def _():
        acc_ref[...] = jnp.zeros_like(acc_ref)

    if hoist_xa:
        # xa is computed only on the first output-column tile of each row tile
        # and reused for j > 0.  This requires j to be a serially-ordered
        # ("arbitrary") axis so the scratch is valid when j > 0 runs.
        @pl.when((j == 0) & (k == 0))
        def _():
            xa_ref[...] = jnp.zeros_like(xa_ref)

        @pl.when(j == 0)
        def _():
            xa_ref[...] += jnp.dot(x_ref[...], a_ref[...],
                                   preferred_element_type=jnp.float32)
    else:
        # Decode path (Ni==1): recompute xa for every output-column tile so the
        # j axis can be "parallel" (feeds v7x's second TensorCore).  Extra cost
        # is only 2*tm*tk*rank flops per tile.
        @pl.when(k == 0)
        def _():
            xa_ref[...] = jnp.zeros_like(xa_ref)

        xa_ref[...] += jnp.dot(x_ref[...], a_ref[...],
                               preferred_element_type=jnp.float32)

    # Frozen path: big MXU matmul, f32 accumulation across K tiles.
    acc_ref[...] += jnp.dot(x_ref[...], wf_ref[...],
                            preferred_element_type=jnp.float32)

    @pl.when(k == nk - 1)
    def _():
        # LoRA path: rank is tiny; xa and bs are both f32 (no mixed-dtype dot),
        # scaling is already folded into bs, so the epilogue is add + cast.
        lora = jnp.dot(xa_ref[...], bs_ref[...],
                       preferred_element_type=jnp.float32)
        o_ref[...] = (acc_ref[...] + lora).astype(o_ref.dtype)


def lora_linear(x, wf_t, a_t, b_t, scaling, *, compute_dtype=None,
                tm=None, tn=None, tk=None, vmem_limit_bytes=None):
    """LoRALinear forward: x @ Wf_t + (x @ A_t) @ B_t * scaling.

    x:    [M, in_f]
    wf_t: [in_f, out_f]   frozen weight, pre-transposed
    a_t:  [in_f, rank]    lora_A weight, pre-transposed
    b_t:  [rank, out_f]   lora_B weight, pre-transposed
    compute_dtype: dtype for x / Wf / A fed to the MXU (pass jnp.bfloat16 for
        the HBM-bound fast path; accumulation stays f32 either way).
    """
    if compute_dtype is not None:
        x = x.astype(compute_dtype)
        wf_t = wf_t.astype(compute_dtype)
        a_t = a_t.astype(compute_dtype)
    # TODO(synk): v7x fp8 / v5e-v6e int8 frozen-weight path (per-channel dequant
    # scale folded into the epilogue) would halve the Wf HBM stream again.

    M, in_f = x.shape
    out_f = wf_t.shape[1]
    rank = a_t.shape[1]

    # Fold scaling into B once, in f32 (tiny array; keeps the "scale after the
    # matmul" semantics exact and the LoRA dot un-mixed f32 x f32).
    b_scaled = b_t.astype(jnp.float32) * jnp.float32(scaling)

    # ---- tile selection -----------------------------------------------------
    # Row tile: larger slabs cut the number of times Wf is re-streamed from HBM
    # (total Wf traffic scales with ceil(M/tm)).  Ragged M is handled by the
    # cdiv grid + Pallas masking of the partial last block, not by padding.
    if tm is None:
        if M >= 512:
            tm = 256
        elif M >= 128:
            tm = 128
        else:
            tm = _round_up(M, 8)
    grid_i = pl.cdiv(M, tm)

    # Output-column tile: 128-multiple so output stores stay lane-dense and Wf
    # is streamed as pipelined column slabs.  Falls back to the full dim for
    # toy shapes that are not 128-aligned.
    if tn is None:
        tn = out_f
        for cand in (512, 256, 128):
            if out_f % cand == 0:
                tn = cand
                break
    grid_j = out_f // tn

    # K (in_features) tile: only tiled when in_f is large, and only with an
    # exact divisor — a partial K block would let garbage columns pollute the
    # accumulation (unlike partial M/N blocks, which only hit masked outputs).
    if tk is None:
        tk = in_f
        if in_f > 2048:
            for cand in (2048, 1024, 512, 256, 128):
                if in_f % cand == 0:
                    tk = cand
                    break
    assert in_f % tk == 0, "K tile must divide in_features exactly"
    grid_k = in_f // tk

    # Decode special case: a single row tile gives megacore nothing to split on
    # the i axis, so drop the j==0 xa hoist and mark j "parallel" instead.
    hoist_xa = not (grid_i == 1 and grid_j > 1)

    if vmem_limit_bytes is None:
        # ~25% headroom below physical VMEM for compiler scratch / spill
        # (v5e/v6e: 128 MiB -> 96 MiB, v7x: 64 MiB -> 48 MiB).
        try:
            cap = pltpu.get_tpu_info().vmem_capacity_bytes
            vmem_limit_bytes = int(cap) * 3 // 4
        except Exception:
            vmem_limit_bytes = 48 * 1024 * 1024

    kernel = functools.partial(_lora_linear_kernel, hoist_xa=hoist_xa)

    return pl.pallas_call(
        kernel,
        out_shape=jax.ShapeDtypeStruct((M, out_f), x.dtype),
        grid_spec=pltpu.PrefetchScalarGridSpec(
            num_scalar_prefetch=0,
            grid=(grid_i, grid_j, grid_k),
            in_specs=[
                pl.BlockSpec((tm, tk), lambda i, j, k: (i, k)),     # x row/K tile
                pl.BlockSpec((tk, tn), lambda i, j, k: (k, j)),     # frozen W tile
                pl.BlockSpec((tk, rank), lambda i, j, k: (k, 0)),   # lora_A K slice
                pl.BlockSpec((rank, tn), lambda i, j, k: (0, j)),   # lora_B (pre-scaled, f32)
            ],
            out_specs=pl.BlockSpec((tm, tn), lambda i, j, k: (i, j)),
            scratch_shapes=[
                pltpu.VMEM((tm, tn), jnp.float32),    # frozen-path accumulator
                pltpu.VMEM((tm, rank), jnp.float32),  # x @ A accumulator
            ],
        ),
        compiler_params=pltpu.CompilerParams(
            dimension_semantics=(
                "parallel",                             # i: independent row tiles
                "arbitrary" if hoist_xa else "parallel",  # j: serial iff xa hoisted
                "arbitrary",                            # k: reduction, innermost
            ),
            vmem_limit_bytes=vmem_limit_bytes,
        ),
    )(x, wf_t, a_t, b_scaled)


def _reference(x2d, wf, lora_A, lora_B, scaling):
    return x2d @ wf.T + (x2d @ lora_A.T) @ lora_B.T * scaling


if __name__ == "__main__":
    key = jax.random.PRNGKey(0)

    # ---- Test 1: small module-consistent shapes, f32 -------------------------
    # in_features=32, out_features=64, rank=8, scaling=2.0, batch=2, seq=8
    batch, seq = 2, 8
    in_features, out_features, rank = 32, 64, 8
    scaling = 2.0

    kx, kwf, ka, kb, key = jax.random.split(key, 5)
    x = jax.random.normal(kx, (batch, seq, in_features), dtype=jnp.float32)
    wf = jax.random.normal(kwf, (out_features, in_features), dtype=jnp.float32) * 0.05
    lora_A = jax.random.normal(ka, (rank, in_features), dtype=jnp.float32) * 0.05
    lora_B = jax.random.normal(kb, (out_features, rank), dtype=jnp.float32) * 0.05

    x2d = x.reshape(batch * seq, in_features)
    y2d = lora_linear(x2d, wf.T, lora_A.T, lora_B.T, scaling)
    y = y2d.reshape(batch, seq, out_features)
    jax.block_until_ready(y)
    ref = _reference(x2d, wf, lora_A, lora_B, scaling).reshape(batch, seq, out_features)
    assert jnp.allclose(y, ref, atol=1e-4, rtol=1e-4), "mismatch vs reference (small f32)"

    # ---- Test 2: ragged M (partial row block, no padding), bf16 fast path -----
    M2, in2, out2, rank2 = 300, 256, 384, 16     # grid = (3, 3, 1)
    kx2, kwf2, ka2, kb2, key = jax.random.split(key, 5)
    x2 = jax.random.normal(kx2, (M2, in2), dtype=jnp.float32)
    wf2 = jax.random.normal(kwf2, (out2, in2), dtype=jnp.float32) * 0.02
    la2 = jax.random.normal(ka2, (rank2, in2), dtype=jnp.float32) * 0.02
    lb2 = jax.random.normal(kb2, (out2, rank2), dtype=jnp.float32) * 0.02

    y2 = lora_linear(x2, wf2.T, la2.T, lb2.T, scaling, compute_dtype=jnp.bfloat16)
    jax.block_until_ready(y2)
    ref2 = _reference(x2, wf2, la2, lb2, scaling)
    assert y2.shape == (M2, out2)
    assert jnp.allclose(y2.astype(jnp.float32), ref2, atol=5e-2, rtol=5e-2), \
        "mismatch vs reference (bf16)"

    # ---- Test 3: decode shape (Ni==1, Nj>1) -> non-hoisted, j-parallel path ----
    M3, in3, out3, rank3 = 8, 128, 512, 8
    kx3, kwf3, ka3, kb3, _ = jax.random.split(key, 5)
    x3 = jax.random.normal(kx3, (M3, in3), dtype=jnp.float32)
    wf3 = jax.random.normal(kwf3, (out3, in3), dtype=jnp.float32) * 0.02
    la3 = jax.random.normal(ka3, (rank3, in3), dtype=jnp.float32) * 0.02
    lb3 = jax.random.normal(kb3, (out3, rank3), dtype=jnp.float32) * 0.02

    y3 = lora_linear(x3, wf3.T, la3.T, lb3.T, scaling, tn=128)   # Ni=1, Nj=4
    jax.block_until_ready(y3)
    ref3 = _reference(x3, wf3, la3, lb3, scaling)
    assert jnp.allclose(y3, ref3, atol=1e-3, rtol=1e-3), "mismatch vs reference (decode)"

    print("KERNEL_OK")
</pallas_src>

<mosaic_0001>
module attributes {stable_mosaic.version = 11 : i64} {
  func.func @_lora_linear_kernel(%arg0: i32, %arg1: i32, %arg2: i32, %arg3: memref<16x32xf32, #tpu.memory_space<vmem>>, %arg4: memref<32x64xf32, #tpu.memory_space<vmem>>, %arg5: memref<32x8xf32, #tpu.memory_space<vmem>>, %arg6: memref<8x64xf32, #tpu.memory_space<vmem>>, %arg7: memref<16x64xf32, #tpu.memory_space<vmem>>, %arg8: memref<16x64xf32, #tpu.memory_space<vmem>>, %arg9: memref<16x8xf32, #tpu.memory_space<vmem>>) attributes {dimension_semantics = [#tpu.dimension_semantics<parallel>, #tpu.dimension_semantics<arbitrary>, #tpu.dimension_semantics<arbitrary>], iteration_bounds = array<i64: 1, 1, 1>, scalar_prefetch = 0 : i64, scratch_operands = 2 : i64, tpu.core_type = #tpu.core_type<tc>, window_params = [{transform_indices = @transform_0, window_bounds = array<i64: 16, 32>}, {transform_indices = @transform_1, window_bounds = array<i64: 32, 64>}, {transform_indices = @transform_2, window_bounds = array<i64: 32, 8>}, {transform_indices = @transform_3, window_bounds = array<i64: 8, 64>}, {transform_indices = @transform_4, window_bounds = array<i64: 16, 64>}]} {
    %c0_i32 = arith.constant 0 : i32
    %0 = arith.cmpi eq, %arg2, %c0_i32 : i32
    %1 = arith.extui %0 : i1 to i32
    %c0_i32_0 = arith.constant 0 : i32
    %2 = arith.cmpi ne, %1, %c0_i32_0 : i32
    scf.if %2 {
      %cst_15 = arith.constant 0.000000e+00 : f32
      %20 = vector.broadcast %cst_15 : f32 to vector<16x64xf32>
      %c0_16 = arith.constant 0 : index
      %c0_17 = arith.constant 0 : index
      %21 = vector.load %arg8[%c0_16, %c0_17] : memref<16x64xf32, #tpu.memory_space<vmem>>, vector<16x64xf32>
      tpu.vector_store %arg8[%c0_16, %c0_17], %20 {strides = array<i32>} : memref<16x64xf32, #tpu.memory_space<vmem>>, vector<16x64xf32>,
    } else {
    }
    %c0_i32_1 = arith.constant 0 : i32
    %3 = arith.cmpi eq, %arg1, %c0_i32_1 : i32
    %c0_i32_2 = arith.constant 0 : i32
    %4 = arith.cmpi eq, %arg2, %c0_i32_2 : i32
    %5 = arith.andi %3, %4 : i1
    %6 = arith.extui %5 : i1 to i32
    %c0_i32_3 = arith.constant 0 : i32
    %7 = arith.cmpi ne, %6, %c0_i32_3 : i32
    scf.if %7 {
      %cst_15 = arith.constant 0.000000e+00 : f32
      %20 = vector.broadcast %cst_15 : f32 to vector<16x8xf32>
      %c0_16 = arith.constant 0 : index
      %c0_17 = arith.constant 0 : index
      %21 = vector.load %arg9[%c0_16, %c0_17] : memref<16x8xf32, #tpu.memory_space<vmem>>, vector<16x8xf32>
      tpu.vector_store %arg9[%c0_16, %c0_17], %20 {strides = array<i32>} : memref<16x8xf32, #tpu.memory_space<vmem>>, vector<16x8xf32>,
    } else {
    }
    %c0_i32_4 = arith.constant 0 : i32
    %8 = arith.cmpi eq, %arg1, %c0_i32_4 : i32
    %9 = arith.extui %8 : i1 to i32
    %c0_i32_5 = arith.constant 0 : i32
    %10 = arith.cmpi ne, %9, %c0_i32_5 : i32
    scf.if %10 {
      %c0_15 = arith.constant 0 : index
      %c0_16 = arith.constant 0 : index
      %20 = vector.load %arg9[%c0_15, %c0_16] : memref<16x8xf32, #tpu.memory_space<vmem>>, vector<16x8xf32>
      %c0_17 = arith.constant 0 : index
      %c0_18 = arith.constant 0 : index
      %21 = vector.load %arg3[%c0_17, %c0_18] : memref<16x32xf32, #tpu.memory_space<vmem>>, vector<16x32xf32>
      %c0_19 = arith.constant 0 : index
      %c0_20 = arith.constant 0 : index
      %22 = vector.load %arg5[%c0_19, %c0_20] : memref<32x8xf32, #tpu.memory_space<vmem>>, vector<32x8xf32>
      %cst_21 = arith.constant dense<0.000000e+00> : vector<16x8xf32>
      %23 = tpu.matmul %21, %22, %cst_21 {dimension_numbers = #tpu.dot_dimension_numbers<[1], [0], [0], [1], [0, 0, 1, 1], [], []>} : vector<16x32xf32>, vector<32x8xf32>, vector<16x8xf32> -> vector<16x8xf32>
      %24 = arith.addf %20, %23 : vector<16x8xf32>
      %c0_22 = arith.constant 0 : index
      %c0_23 = arith.constant 0 : index
      %25 = vector.load %arg9[%c0_22, %c0_23] : memref<16x8xf32, #tpu.memory_space<vmem>>, vector<16x8xf32>
      tpu.vector_store %arg9[%c0_22, %c0_23], %24 {strides = array<i32>} : memref<16x8xf32, #tpu.memory_space<vmem>>, vector<16x8xf32>,
    } else {
    }
    %c0 = arith.constant 0 : index
    %c0_6 = arith.constant 0 : index
    %11 = vector.load %arg8[%c0, %c0_6] : memref<16x64xf32, #tpu.memory_space<vmem>>, vector<16x64xf32>
    %c0_7 = arith.constant 0 : index
    %c0_8 = arith.constant 0 : index
    %12 = vector.load %arg3[%c0_7, %c0_8] : memref<16x32xf32, #tpu.memory_space<vmem>>, vector<16x32xf32>
    %c0_9 = arith.constant 0 : index
    %c0_10 = arith.constant 0 : index
    %13 = vector.load %arg4[%c0_9, %c0_10] : memref<32x64xf32, #tpu.memory_space<vmem>>, vector<32x64xf32>
    %cst = arith.constant dense<0.000000e+00> : vector<16x64xf32>
    %14 = tpu.matmul %12, %13, %cst {dimension_numbers = #tpu.dot_dimension_numbers<[1], [0], [0], [1], [0, 0, 1, 1], [], []>} : vector<16x32xf32>, vector<32x64xf32>, vector<16x64xf32> -> vector<16x64xf32>
    %15 = arith.addf %11, %14 : vector<16x64xf32>
    %c0_11 = arith.constant 0 : index
    %c0_12 = arith.constant 0 : index
    %16 = vector.load %arg8[%c0_11, %c0_12] : memref<16x64xf32, #tpu.memory_space<vmem>>, vector<16x64xf32>
    tpu.vector_store %arg8[%c0_11, %c0_12], %15 {strides = array<i32>} : memref<16x64xf32, #tpu.memory_space<vmem>>, vector<16x64xf32>,
    %c0_i32_13 = arith.constant 0 : i32
    %17 = arith.cmpi eq, %arg2, %c0_i32_13 : i32
    %18 = arith.extui %17 : i1 to i32
    %c0_i32_14 = arith.constant 0 : i32
    %19 = arith.cmpi ne, %18, %c0_i32_14 : i32
    scf.if %19 {
      %c0_15 = arith.constant 0 : index
      %c0_16 = arith.constant 0 : index
      %20 = vector.load %arg9[%c0_15, %c0_16] : memref<16x8xf32, #tpu.memory_space<vmem>>, vector<16x8xf32>
      %c0_17 = arith.constant 0 : index
      %c0_18 = arith.constant 0 : index
      %21 = vector.load %arg6[%c0_17, %c0_18] : memref<8x64xf32, #tpu.memory_space<vmem>>, vector<8x64xf32>
      %cst_19 = arith.constant dense<0.000000e+00> : vector<16x64xf32>
      %22 = tpu.matmul %20, %21, %cst_19 {dimension_numbers = #tpu.dot_dimension_numbers<[1], [0], [0], [1], [0, 0, 1, 1], [], []>} : vector<16x8xf32>, vector<8x64xf32>, vector<16x64xf32> -> vector<16x64xf32>
      %c0_20 = arith.constant 0 : index
      %c0_21 = arith.constant 0 : index
      %23 = vector.load %arg8[%c0_20, %c0_21] : memref<16x64xf32, #tpu.memory_space<vmem>>, vector<16x64xf32>
      %24 = arith.addf %23, %22 : vector<16x64xf32>
      %c0_22 = arith.constant 0 : index
      %c0_23 = arith.constant 0 : index
      %25 = vector.load %arg7[%c0_22, %c0_23] : memref<16x64xf32, #tpu.memory_space<vmem>>, vector<16x64xf32>
      tpu.vector_store %arg7[%c0_22, %c0_23], %24 {strides = array<i32>} : memref<16x64xf32, #tpu.memory_space<vmem>>, vector<16x64xf32>,
    } else {
    }
    return
  }
  func.func @transform_0(%arg0: i32, %arg1: i32, %arg2: i32) -> (i32, i32) {
    %c0_i32 = arith.constant 0 : i32
    return %arg0, %arg2 : i32, i32
  }
  func.func @transform_1(%arg0: i32, %arg1: i32, %arg2: i32) -> (i32, i32) {
    %c0_i32 = arith.constant 0 : i32
    return %arg2, %arg1 : i32, i32
  }
  func.func @transform_2(%arg0: i32, %arg1: i32, %arg2: i32) -> (i32, i32) {
    %c0_i32 = arith.constant 0 : i32
    %c0_i32_0 = arith.constant 0 : i32
    return %arg2, %c0_i32 : i32, i32
  }
  func.func @transform_3(%arg0: i32, %arg1: i32, %arg2: i32) -> (i32, i32) {
    %c0_i32 = arith.constant 0 : i32
    %c0_i32_0 = arith.constant 0 : i32
    return %c0_i32, %arg1 : i32, i32
  }
  func.func @transform_4(%arg0: i32, %arg1: i32, %arg2: i32) -> (i32, i32) {
    %c0_i32 = arith.constant 0 : i32
    return %arg0, %arg1 : i32, i32
  }
}

</mosaic_0001>

<bundles_post_ra>
// kernel: tpu_custom_call.1
= control target key start
LH: loop header
LB: loop body
LE: loop exit
PB: predicated region body
PF: predicated region fallthrough
CT: control target
= control target key end

     0   :  { %9 = vsyncpa [#allocation5], 0  ;;  %s571_s0 = inlined_call_operand.hbm [shape: f32[16,32], index: 0, kind: input, shape index: {}]   ;;  %s572_s1 = inlined_call_operand.vmem [shape: f32[32,64], index: 1, kind: input, shape index: {}]   ;;  %s573_s2 = inlined_call_operand.vmem [shape: f32[32,8], index: 2, kind: input, shape index: {}]   ;;  %s574_s3 = inlined_call_operand.vmem [shape: f32[8,64], index: 3, kind: input, shape index: {}]   ;;  %s575_s4 = inlined_call_operand.hbm [shape: f32[16,64], index: 4, kind: output, shape index: {}]  }
   0x1   :  { %10 = vsyncpa [#allocation6], 0  ;;  %s468_s15 = smov [#allocation4]   ;;  %s420_s19 = scalar_lea.hbm %s571_s0, 256 }
   0x2   :  { %s16_s16 = sshll.u32 %s468_s15, 4  ;;  %p421_p0 = scmp.ne.s32.totalorder %s571_s0, %s420_s19  ;;  %s17_s16 = int_to_ptr.vmem [resolvable:$true] %s16_s16 }
   0x3   :  { %p424_p1 = scmp.lt.u32.totalorder %s420_s19, %s571_s0 }
   0x5   :  { %p426_p2 = pnand %p424_p1, %p421_p0 }
   0x7   :  { %429 = shalt.err (!%p426_p2)
}
   0x8   :  { %s430_s24 = scalar_lea.vmem %s17_s16, 256  ;;  %p435_p4 = scmp.lt.s32.totalorder %s17_s16, %s17_s16 }
   0x9   :  { %p431_p3 = scmp.ne.s32.totalorder %s17_s16, %s430_s24  ;;  %p436_p5 = scmp.lt.s32.totalorder %s430_s24, %s430_s24 }
   0xb   :  { %p437_p6 = por %p436_p5, %p435_p4 }
   0xd   :  { %p438_p7 = pnand %p437_p6, %p431_p3 }
   0xf   :  { %441 = shalt.err (!%p438_p7)
}
  0x10   :  { %s469_s25 = smov 128   ;;  %s470_s26 = smov 8  }
  0x11   :  { %22 = dma.hbm_to_vmem [thread:$0]  %s571_s0, 256, %s17_s16, [#allocation5], %s469_s25, %s469_s25, %s470_s26  }
  0x12   :  { %464 = dma.done.wait [#allocation5], 256  }
  0x13   :  { %465 = vsyncadd [#allocation5], 4294967040  ;;  %vm44_vm0 = vcmask 64512   ;;  %v471_v0 = vmov 0.0   ;;  %vm58_vm1 = vcmask 261120   ;;  %v54_v1 = vld [vmem:[%s573_s2] sm:$0xff] }
  0x14   :  { %46 = vst.msk [vmem:[#allocation3 + $0x8] sm:$0xff] %vm44_vm0, %v471_v0  ;;  %45 = vst.msk [vmem:[#allocation3] sm:$0xff] %vm44_vm0, %v471_v0  ;;  %v55_v2 = vld [vmem:[%s573_s2 + $0x8] sm:$0xff]  ;;  %v56_v3 = vld [vmem:[%s573_s2 + $0x10] sm:$0xff]  ;;  %vm36_vm2 = vcmask 523264  }
  0x15   :  { %v399_v4 = vpack.c.bf16 %v55_v2, %v54_v1  ;;  %v57_v5 = vld [vmem:[%s573_s2 + $0x18] sm:$0xff]  ;;  %v52_v6 = vld [vmem:[#allocation4] sm:$0xff]  ;;  %v150_v9 = vld [vmem:[%s572_s1 + $0x8] sm:$0xff]  ;;  %38 = vst.msk [vmem:[#allocation2 + $0x8] sm:$0xff] %vm36_vm2, %v471_v0 }
  0x16   :  { %v403_v7 = vpack.c.bf16 %v57_v5, %v56_v3  ;;  %380 = vmatprep.mubr.msk.f32.mxu0 %vm58_vm1, %v52_v6  ;;  %v149_v8 = vld [vmem:[%s572_s1] sm:$0xff]  ;;  %v151_v10 = vld [vmem:[%s572_s1 + $0x10] sm:$0xff]  ;;  %391 = vmatprep.mubr.msk.f32.mxu1 %vm58_vm1, %v52_v6  ;;  %v152_v12 = vld [vmem:[%s572_s1 + $0x18] sm:$0xff]  ;;  %37 = vst.msk [vmem:[#allocation2] sm:$0xff] %vm36_vm2, %v471_v0  ;;  %s472_s1 = smov [#allocation7]  }
  0x17   :  { %400 = vmatprep.subr.bf16.mxu0 %v399_v4  ;;  %v407_v11 = vpack.c.bf16 %v150_v9, %v149_v8  ;;  %v411_v13 = vpack.c.bf16 %v152_v12, %v151_v10  ;;  %v53_v14 = vld [vmem:[#allocation4 + $0x8] sm:$0xff]  ;;  %v245_v15 = vld [vmem:[%s574_s3] sm:$0xff]  ;;  %s339_s3 = sshll.u32 %s472_s1, 4  ;;  %s340_s3 = int_to_ptr.vmem [resolvable:$true] %s339_s3 }
  0x18   :  { %402 = vmatpush3.bf16.msra.mxu0 %v399_v4  ;;  %s442_s19 = scalar_lea.vmem %s340_s3, 256  ;;  %p447_p9 = scmp.lt.s32.totalorder %s340_s3, %s340_s3 }
  0x19   :  { %404 = vmatprep.subr.bf16.mxu0 %v403_v7  ;;  %408 = vmatprep.subr.bf16.mxu1 %v407_v11  ;;  %p443_p8 = scmp.ne.s32.totalorder %s340_s3, %s442_s19  ;;  %p448_p10 = scmp.lt.s32.totalorder %s442_s19, %s442_s19 }
  0x1a   :  { %410 = vmatpush3.bf16.msra.mxu1 %v407_v11 }
  0x1b   :  { %412 = vmatprep.subr.bf16.mxu1 %v411_v13  ;;  %v51_v16 = vld [vmem:[#allocation3 + $0x8] sm:$0xff]  ;;  %v50_v17 = vld [vmem:[#allocation3] sm:$0xff]  ;;  %p449_p11 = por %p448_p10, %p447_p9 }
  0x1c   :  { %406 = vmatpush3.bf16.msra.mxu0 %v403_v7  ;;  %v146_v19 = vld [vmem:[#allocation2 + $0x8] sm:$0xff] }
  0x1d   :  { %394 = vmatprep.subr.mxu0 %v245_v15  ;;  %v145_v22 = vld [vmem:[#allocation2] sm:$0xff]  ;;  %p450_p12 = pnand %p449_p11, %p443_p8 }
  0x1e   :  { %414 = vmatpush3.bf16.msra.mxu1 %v411_v13 }
  0x1f   :  { %381 = vmatmul.mubr.msk.f32.vlgmr.msra.gmra.mrb[0].mxu0 %vm58_vm1, %v53_v14 }
  0x20   :  { %395 = vmatpush3.msra.mxu0 %v245_v15 }
  0x21   :  { %392 = vmatmul.mubr.msk.f32.vlgmr.msra.gmra.mrb[0].mxu1 %vm58_vm1, %v53_v14 }
  0xf2   :  { %v382_v18 = vpop.f32.mrb[0].mxu0 }
  0xf3   :  { %v141_v20 = vadd.f32 %v382_v18, %v51_v16  ;;  %v131_v21 = vpop.f32.mrb[1].mxu0 }
  0xf4   :  { %v140_v23 = vadd.f32 %v131_v21, %v50_v17  ;;  %v393_v24 = vpop.f32.mrb[0].mxu1 }
  0xf5   :  { %144 = vst.msk [vmem:[#allocation3 + $0x8] sm:$0xff] %vm44_vm0, %v141_v20  ;;  %v236_v25 = vadd.f32 %v393_v24, %v146_v19  ;;  %v226_v26 = vpop.f32.mrb[1].mxu1 }
  0xf6   :  { %143 = vst.msk [vmem:[#allocation3] sm:$0xff] %vm44_vm0, %v140_v23  ;;  %v235_v27 = vadd.f32 %v226_v26, %v145_v22 }
  0xf7   :  { %239 = vst.msk [vmem:[#allocation2 + $0x8] sm:$0xff] %vm36_vm2, %v236_v25 }
  0xf8   :  { %238 = vst.msk [vmem:[#allocation2] sm:$0xff] %vm36_vm2, %v235_v27 }
  0xfc   :  { %v244_v29 = vld [vmem:[#allocation3 + $0x8] sm:$0xff] }
  0xfd   :  { %v243_v28 = vld [vmem:[#allocation3] sm:$0xff] }
  0xfe   :  { %396 = vmatprep.mubr.msk.f32.mxu0 %vm44_vm0, %v243_v28  ;;  %v329_v30 = vld [vmem:[#allocation2 + $0x8] sm:$0xff] }
  0xff   :  { %397 = vmatmul.mubr.msk.f32.vlgmr.msra.gmra.mrb[2].mxu0 %vm44_vm0, %v244_v29  ;;  %v328_v31 = vld [vmem:[#allocation2] sm:$0xff] }
 0x1d2   :  { %v398_v32 = vpop.f32.mrb[2].mxu0 }
 0x1d3   :  { %v331_v33 = vadd.f32 %v398_v32, %v329_v30  ;;  %v319_v34 = vpop.f32.mrb[3].mxu0 }
 0x1d4   :  { %v330_v35 = vadd.f32 %v328_v31, %v319_v34 }
 0x1d5   :  { %333 = vst.msk [vmem:[#allocation7 + $0x8] sm:$0xff] %vm36_vm2, %v331_v33 }
 0x1d6   :  { %332 = vst.msk [vmem:[#allocation7] sm:$0xff] %vm36_vm2, %v330_v35 }
 0x1d7   :  { %453 = shalt.err (!%p450_p12)
}
 0x1d8   :  { %s454_s22 = scalar_lea.hbm %s575_s4, 256 }
 0x1d9   :  { %p455_p13 = scmp.ne.s32.totalorder %s575_s4, %s454_s22  ;;  %p458_p0 = scmp.lt.u32.totalorder %s454_s22, %s575_s4 }
 0x1db   :  { %p460_p1 = pnand %p458_p0, %p455_p13 }
 0x1dd   :  { %463 = shalt.err (!%p460_p1)
}
 0x1de   :  { %345 = dma.vmem_to_hbm [thread:$0]  %s340_s3, 256, %s575_s4, [#allocation6], %s469_s25, %s469_s25, %s470_s26  }
 0x1df   :  { %466 = dma.done.wait [#allocation6], 256  }
 0x1e0   :  { %467 = vsyncadd [#allocation6], 4294967040 }
 0x1e1   :  { %349 = vsyncpa [#allocation5], 1 }
 0x1e2   :  { %350 = vsyncpa [#allocation6], 1 }

</bundles_post_ra>
